<compile_context>
chip_gen: v5e
topology: v5e:2x2
jax: 0.10.0
libtpu: 0.0.40
codegen_flags: <defaults>
</compile_context>

<pallas_src>
import functools

import jax
import jax.numpy as jnp
from jax.experimental import pallas as pl
from jax.experimental.pallas import tpu as pltpu

LEAKY_SLOPE = 0.01  # PyTorch nn.LeakyReLU default negative_slope

_VMEM_BUDGET = 40 * 2**20   # target working-set; leaves headroom on v7x (64 MiB/TC)


def _round_up(x, m):
    return (x + m - 1) // m * m


def _cdiv(a, b):
    return -(-a // b)


def residual_block_kernel(x_ref, w_ref, b_ref, o_ref, *, tn, n_tiles, mxu_dtype):
    # x_ref: (tb, n_pad) f32        w_ref: (n_pad, tn) in (in, out) layout
    # b_ref: (1, tn)                o_ref: (tb, tn)
    x = x_ref[...]
    # Canonical (non-transposed) MXU contraction; W was transposed once in the
    # wrapper, so no per-grid-step transpose of the resident weight.
    y = jnp.dot(x.astype(mxu_dtype), w_ref[...],
                preferred_element_type=jnp.float32)
    if n_tiles == 1:
        x_res = x                                    # residual = whole block
    else:
        col0 = pl.multiple_of(pl.program_id(1) * tn, tn)   # lane-aligned start
        x_res = x_ref[:, pl.ds(col0, tn)]            # f32 residual slice
    z = y + b_ref[...] + x_res                       # bias broadcast + residual
    o_ref[...] = jnp.maximum(z, LEAKY_SLOPE * z).astype(o_ref.dtype)


@functools.partial(jax.jit, static_argnames=("block_b", "mxu_dtype"))
def residual_block(x, w, b, *, block_b=512, mxu_dtype=jnp.float32):
    """LeakyReLU(x @ w.T + b + x).

    x: (B, n) f32; w: (n, n) PyTorch (out, in) layout; b: (n,).
    mxu_dtype=jnp.bfloat16 runs the matmul in bf16 (f32 accumulation); bias,
    residual and activation stay f32.
    """
    B, n = x.shape
    x_itemsize = jnp.dtype(x.dtype).itemsize
    w_itemsize = jnp.dtype(mxu_dtype).itemsize

    # ---- feature (lane) padding + output-feature (N) tiling ------------------
    n_pad = _round_up(n, 128)
    if n_pad <= 2048:
        tn, n_tiles = n_pad, 1                 # weight fully VMEM-resident
    else:
        n_pad = _round_up(n, 512)              # ensure tn | n_pad (no OOB slice)
        tn = 1024 if n_pad % 1024 == 0 else 512
        n_tiles = n_pad // tn

    # ---- batch tiling (ragged last tile; no batch padding) -------------------
    # Force >= 2 batch tiles when there is no feature-tile parallelism so both
    # v7x TensorCores get work (harmless elsewhere).
    num_b_tiles = max(_cdiv(B, block_b), 2 if (B >= 16 and n_tiles == 1) else 1)
    tb = _round_up(_cdiv(B, num_b_tiles), 8)

    w_bufs = 1 if n_tiles == 1 else 2          # single-buffer the resident weight

    def footprint(tb_):
        return (2 * tb_ * n_pad * x_itemsize           # x double buffer
                + 2 * tb_ * tn * x_itemsize            # out double buffer
                + w_bufs * n_pad * tn * w_itemsize     # weight buffer(s)
                + 2 * tn * x_itemsize)                 # bias

    # Shrink the batch tile if the working set would bust the VMEM budget.
    # TODO(synk): if the weight tile alone exceeds the budget (huge n even in
    # bf16), add a K-tiling "arbitrary" grid axis with an f32 VMEM accumulator.
    while footprint(tb) > _VMEM_BUDGET and tb > 8:
        tb = max(8, _round_up(tb // 2, 8))
    grid_b = _cdiv(B, tb)

    # ---- operand prep (only pad the feature/K dim, only when needed) ---------
    feat_pad = n_pad - n
    x_p = x if feat_pad == 0 else jnp.pad(x, ((0, 0), (0, feat_pad)))
    # Pre-transpose W once to (in, out); padded rows/cols and bias lanes are
    # zero, so padded output lanes are exactly 0 and sliced off below.
    w_t = w.T
    if feat_pad:
        w_t = jnp.pad(w_t, ((0, feat_pad), (0, feat_pad)))
    w_t = w_t.astype(mxu_dtype)
    b_p = (b if feat_pad == 0 else jnp.pad(b, (0, feat_pad))).reshape(1, n_pad)

    grid = (grid_b, n_tiles)                   # j (features) innermost: x stays put
    w_mode = pl.Buffered(w_bufs)

    vmem_limit = int(min(64 * 2**20,
                         max(int(footprint(tb) * 1.5), 16 * 2**20)))

    flops = 2 * B * n_pad * n_pad
    bytes_accessed = int(x_itemsize * (x_p.size + b_p.size + B * n_pad)
                         + grid_b * w_t.size * w_itemsize)

    kernel = functools.partial(residual_block_kernel,
                               tn=tn, n_tiles=n_tiles, mxu_dtype=mxu_dtype)

    out = pl.pallas_call(
        kernel,
        out_shape=jax.ShapeDtypeStruct((B, n_pad), x.dtype),
        grid=grid,
        in_specs=[
            pl.BlockSpec((tb, n_pad), lambda i, j: (i, 0)),        # X: batch-tiled, full K
            pl.BlockSpec((n_pad, tn), lambda i, j: (0, j),         # W_t: N-tiled
                         pipeline_mode=w_mode),
            pl.BlockSpec((1, tn), lambda i, j: (0, j),             # bias
                         pipeline_mode=w_mode),
        ],
        out_specs=pl.BlockSpec((tb, tn), lambda i, j: (i, j)),
        compiler_params=pltpu.CompilerParams(
            dimension_semantics=("parallel", "parallel"),
            vmem_limit_bytes=vmem_limit),
        cost_estimate=pl.CostEstimate(
            flops=flops, transcendentals=0, bytes_accessed=bytes_accessed),
    )(x_p, w_t, b_p)

    return out if feat_pad == 0 else out[:, :n]


def reference(x, w, b):
    z = x @ w.T + b + x
    return jnp.where(z >= 0, z, LEAKY_SLOPE * z)


if __name__ == "__main__":
    key = jax.random.PRNGKey(0)
    B, n = 8, 32  # small shapes: batch=8, hidden=32

    kx, kw, kb = jax.random.split(key, 3)
    x = jax.random.normal(kx, (B, n), dtype=jnp.float32)

    # Deterministic init mimicking nn.Linear default: U(-1/sqrt(n), 1/sqrt(n))
    bound = 1.0 / jnp.sqrt(jnp.float32(n))
    w = jax.random.uniform(kw, (n, n), minval=-bound, maxval=bound,
                           dtype=jnp.float32)
    b = jax.random.uniform(kb, (n,), minval=-bound, maxval=bound,
                           dtype=jnp.float32)

    ref = reference(x, w, b)

    # f32 MXU path: exact match to the PyTorch/f32 reference.
    out = jax.block_until_ready(residual_block(x, w, b))
    assert out.shape == (B, n)
    assert jnp.allclose(out, ref, atol=1e-5, rtol=1e-5)

    # bf16 MXU path (perf knob for large n): matmul in bf16, f32 accumulation,
    # bias/residual/activation in f32 — small expected deviation from f32 ref.
    out_bf16 = jax.block_until_ready(
        residual_block(x, w, b, mxu_dtype=jnp.bfloat16))
    assert jnp.allclose(out_bf16, ref, atol=5e-2, rtol=5e-2)

    print("KERNEL_OK")
</pallas_src>

<mosaic_0001>
module attributes {stable_mosaic.version = 11 : i64} {
  func.func @residual_block_kernel(%arg0: i32, %arg1: i32, %arg2: memref<8x128xf32, #tpu.memory_space<vmem>>, %arg3: memref<128x128xf32, #tpu.memory_space<vmem>>, %arg4: memref<1x128xf32, #tpu.memory_space<vmem>>, %arg5: memref<8x128xf32, #tpu.memory_space<vmem>>) attributes {dimension_semantics = [#tpu.dimension_semantics<parallel>, #tpu.dimension_semantics<parallel>], iteration_bounds = array<i64: 1, 1>, scalar_prefetch = 0 : i64, scratch_operands = 0 : i64, tpu.core_type = #tpu.core_type<tc>, window_params = [{transform_indices = @transform_0, window_bounds = array<i64: 8, 128>}, {pipeline_mode = #tpu.pipeline_mode<synchronous>, transform_indices = @transform_1, window_bounds = array<i64: 128, 128>}, {pipeline_mode = #tpu.pipeline_mode<synchronous>, transform_indices = @transform_2, window_bounds = array<i64: 1, 128>}, {transform_indices = @transform_3, window_bounds = array<i64: 8, 128>}]} {
    %c0 = arith.constant 0 : index
    %c0_0 = arith.constant 0 : index
    %0 = vector.load %arg2[%c0, %c0_0] : memref<8x128xf32, #tpu.memory_space<vmem>>, vector<8x128xf32>
    %c0_1 = arith.constant 0 : index
    %c0_2 = arith.constant 0 : index
    %1 = vector.load %arg3[%c0_1, %c0_2] : memref<128x128xf32, #tpu.memory_space<vmem>>, vector<128x128xf32>
    %cst = arith.constant dense<0.000000e+00> : vector<8x128xf32>
    %2 = tpu.matmul %0, %1, %cst {dimension_numbers = #tpu.dot_dimension_numbers<[1], [0], [0], [1], [0, 0, 1, 1], [], []>} : vector<8x128xf32>, vector<128x128xf32>, vector<8x128xf32> -> vector<8x128xf32>
    %c0_3 = arith.constant 0 : index
    %c0_4 = arith.constant 0 : index
    %3 = vector.load %arg4[%c0_3, %c0_4] : memref<1x128xf32, #tpu.memory_space<vmem>>, vector<1x128xf32>
    %4 = vector.broadcast %3 : vector<1x128xf32> to vector<8x128xf32>
    %5 = arith.addf %2, %4 : vector<8x128xf32>
    %6 = arith.addf %5, %0 : vector<8x128xf32>
    %cst_5 = arith.constant 0.00999999977 : f32
    %7 = vector.broadcast %cst_5 : f32 to vector<8x128xf32>
    %8 = arith.mulf %7, %6 : vector<8x128xf32>
    %9 = arith.maximumf %6, %8 : vector<8x128xf32>
    %c0_6 = arith.constant 0 : index
    %c0_7 = arith.constant 0 : index
    %10 = vector.load %arg5[%c0_6, %c0_7] : memref<8x128xf32, #tpu.memory_space<vmem>>, vector<8x128xf32>
    tpu.vector_store %arg5[%c0_6, %c0_7], %9 {strides = array<i32>} : memref<8x128xf32, #tpu.memory_space<vmem>>, vector<8x128xf32>,
    return
  }
  func.func @transform_0(%arg0: i32, %arg1: i32) -> (i32, i32) {
    %c0_i32 = arith.constant 0 : i32
    %c0_i32_0 = arith.constant 0 : i32
    return %arg0, %c0_i32 : i32, i32
  }
  func.func @transform_1(%arg0: i32, %arg1: i32) -> (i32, i32) {
    %c0_i32 = arith.constant 0 : i32
    %c0_i32_0 = arith.constant 0 : i32
    return %c0_i32, %arg1 : i32, i32
  }
  func.func @transform_2(%arg0: i32, %arg1: i32) -> (i32, i32) {
    %c0_i32 = arith.constant 0 : i32
    %c0_i32_0 = arith.constant 0 : i32
    return %c0_i32, %arg1 : i32, i32
  }
  func.func @transform_3(%arg0: i32, %arg1: i32) -> (i32, i32) {
    %c0_i32 = arith.constant 0 : i32
    return %arg0, %arg1 : i32, i32
  }
}

</mosaic_0001>

<bundles_post_ra>
// kernel: residual_block.1
= control target key start
LH: loop header
LB: loop body
LE: loop exit
PB: predicated region body
PF: predicated region fallthrough
CT: control target
= control target key end

     0   :  { %s182_s0 = inlined_call_operand.vmem [shape: f32[8,128], index: 0, kind: input, shape index: {}]   ;;  %s183_s1 = inlined_call_operand.vmem [shape: f32[128,128], index: 1, kind: input, shape index: {}]   ;;  %s184_s2 = inlined_call_operand.vmem [shape: f32[1,128], index: 2, kind: input, shape index: {}]   ;;  %s185_s3 = inlined_call_operand.hbm [shape: f32[8,128], index: 3, kind: output, shape index: {}]  }
   0x1   :  { %v31_v0 = vld [vmem:[%s183_s1 + $0x78] sm:$0xff]  ;;  %v30_v1 = vld [vmem:[%s183_s1 + $0x70] sm:$0xff]  ;;  %v29_v2 = vld [vmem:[%s183_s1 + $0x68] sm:$0xff] }
   0x2   :  { %36 = vmatpush.msra.mxu0 %v31_v0  ;;  %v28_v3 = vld [vmem:[%s183_s1 + $0x60] sm:$0xff]  ;;  %v27_v4 = vld [vmem:[%s183_s1 + $0x58] sm:$0xff] }
   0x4   :  { %37 = vmatpush.msra.mxu0 %v30_v1 }
   0x6   :  { %38 = vmatpush.msra.mxu0 %v29_v2 }
   0x7   :  { %8 = vsyncpa [#allocation3], 0  ;;  %v26_v5 = vld [vmem:[%s183_s1 + $0x50] sm:$0xff]  ;;  %v25_v6 = vld [vmem:[%s183_s1 + $0x48] sm:$0xff]  ;;  %s104_s21 = smov [#allocation2]  }
   0x8   :  { %39 = vmatpush.msra.mxu0 %v28_v3  ;;  %v24_v7 = vld [vmem:[%s183_s1 + $0x40] sm:$0xff]  ;;  %v23_v8 = vld [vmem:[%s183_s1 + $0x38] sm:$0xff]  ;;  %v22_v9 = vld [vmem:[%s183_s1 + $0x30] sm:$0xff]  ;;  %s65_s22 = sshll.u32 %s104_s21, 4  ;;  %s66_s22 = int_to_ptr.vmem [resolvable:$true] %s65_s22 }
   0x9   :  { %v21_v10 = vld [vmem:[%s183_s1 + $0x28] sm:$0xff]  ;;  %v20_v11 = vld [vmem:[%s183_s1 + $0x20] sm:$0xff]  ;;  %v19_v12 = vld [vmem:[%s183_s1 + $0x18] sm:$0xff] }
   0xa   :  { %40 = vmatpush.msra.mxu0 %v27_v4  ;;  %v18_v13 = vld [vmem:[%s183_s1 + $0x10] sm:$0xff]  ;;  %v17_v14 = vld [vmem:[%s183_s1 + $0x8] sm:$0xff]  ;;  %v16_v15 = vld [vmem:[%s183_s1] sm:$0xff]  ;;  %s67_s1 = sshll.u32 %s185_s3, 4  ;;  %s68_s1 = int_to_ptr.hbm [resolvable:$true] %s67_s1 }
   0xb   :  { %v15_v16 = vld [vmem:[%s182_s0] sm:$0xff] }
   0xc   :  { %41 = vmatpush.msra.mxu0 %v26_v5  ;;  %v77_v17 = vld [vmem:[%s184_s2] ss:$0 sm:$0xff] }
   0xe   :  { %42 = vmatpush.msra.mxu0 %v25_v6 }
  0x10   :  { %43 = vmatpush.msra.mxu0 %v24_v7 }
  0x12   :  { %44 = vmatpush.msra.mxu0 %v23_v8 }
  0x14   :  { %45 = vmatpush.msra.mxu0 %v22_v9 }
  0x16   :  { %46 = vmatpush.msra.mxu0 %v21_v10 }
  0x18   :  { %47 = vmatpush.msra.mxu0 %v20_v11 }
  0x1a   :  { %48 = vmatpush.msra.mxu0 %v19_v12 }
  0x1c   :  { %49 = vmatpush.msra.mxu0 %v18_v13 }
  0x1e   :  { %50 = vmatpush.msra.mxu0 %v17_v14 }
  0x20   :  { %51 = vmatpush.msra.mxu0 %v16_v15 }
  0x21   :  { %52 = vmatmul.f32.vlgmr.msra.gmra.mxu0 %v15_v16 }
  0x9e   :  { %v53_v18 = vpop.f32.mrf.mxu0 }
  0x9f   :  { %v54_v19 = vadd.f32 %v77_v17, %v53_v18 }
  0xa1   :  { %v56_v20 = vadd.f32 %v54_v19, %v15_v16 }
  0xa3   :  { %v57_v21 = vmul.f32 0.01, %v56_v20 }
  0xa5   :  { %v58_v22 = vmax.f32 %v56_v20, %v57_v21 }
  0xa7   :  { %59 = vst [vmem:[#allocation2] sm:$0xff] %v58_v22 }
  0xa8   :  { %70 = dma.vmem_to_hbm [thread:$0]  %s66_s22, 128, %s68_s1, [#allocation3]  }
  0xa9   :  { %102 = dma.done.wait [#allocation3], 128  }
  0xaa   :  { %103 = vsyncadd [#allocation3], 4294967168 }
  0xab   :  { %75 = vsyncpa [#allocation3], 1 }

</bundles_post_ra>
